<compile_context>
chip_gen: v7x
topology: tpu7x:2x2x1
jax: 0.10.0
libtpu: 0.0.40
codegen_flags: <defaults>
</compile_context>

<pallas_src>
import functools

import jax
import jax.numpy as jnp
from jax.experimental import pallas as pl
from jax.experimental.pallas import tpu as pltpu

_SQRT_2_OVER_PI = 0.7978845608028654
_GELU_TANH_C = 0.044715
_INV_SQRT2 = 0.7071067811865476


def _fused_mlp_kernel(x_ref, *refs, num_layers, approx_gelu, use_bf16):
    """Fused MLP: chain of (x @ W + b) with GELU on hidden layers, sigmoid last.

    refs = (w0, b0, w1, b1, ..., w_{L-1}, b_{L-1}, o_ref); all tiles live in
    VMEM, intermediate activations are staged by the compiler (vregs / VMEM).
    """
    o_ref = refs[-1]
    wb = refs[:-1]

    h = x_ref[...]
    for i in range(num_layers):
        w = wb[2 * i][...]
        b = wb[2 * i + 1][...]          # (1, Dout) -> broadcasts over batch rows
        lhs = h.astype(jnp.bfloat16) if use_bf16 else h
        y = jnp.dot(lhs, w, preferred_element_type=jnp.float32) + b
        if i < num_layers - 1:
            if approx_gelu:
                # tanh-approx GELU: tanh goes to the EUP slot (VALU stays free).
                y = 0.5 * y * (1.0 + jnp.tanh(
                    _SQRT_2_OVER_PI * (y + _GELU_TANH_C * y * y * y)))
            else:
                # exact erf GELU == torch.nn.GELU() default semantics.
                y = 0.5 * y * (1.0 + jax.lax.erf(y * _INV_SQRT2))
        else:
            y = jax.nn.sigmoid(y)
        h = y
    o_ref[...] = h.astype(o_ref.dtype)


def mlp_forward(x, params, *, batch_tile=512, use_bf16=True, approx_gelu=True,
                pad_input_to_lanes=True):
    """x: (B, 108) f32; params: list of (W (in,out) f32, b (1,out) f32)."""
    B, Din = x.shape
    L = len(params)
    Dout = params[-1][0].shape[1]
    f32 = jnp.float32
    mxu_dtype = jnp.bfloat16 if use_bf16 else f32

    # --- Din padding (108 -> 128): full lane-aligned K tile for the 1st matmul.
    Din_p = pl.cdiv(Din, 128) * 128 if pad_input_to_lanes else Din

    # --- Prepare params: pad W0 rows with zeros, cast weights to MXU dtype.
    prepped = []
    for li, (w, b) in enumerate(params):
        if li == 0 and Din_p != Din:
            w = jnp.pad(w, ((0, Din_p - Din), (0, 0)))
        prepped.append((w.astype(mxu_dtype), b.astype(f32)))

    # --- Batch tiling: single whole-array block for small B; TB-row tiles
    # on a "parallel" grid axis for large B (>=2 steps -> both v7x TCs used).
    if B <= batch_tile:
        TB = B
        x_p = x
    else:
        TB = max(8, (batch_tile // 8) * 8)        # keep sublane (8) alignment
        Bp = pl.cdiv(B, TB) * TB
        x_p = jnp.pad(x, ((0, Bp - B), (0, 0))) if Bp != B else x
    if Din_p != Din:
        x_p = jnp.pad(x_p, ((0, 0), (0, Din_p - Din)))
    x_p = x_p.astype(mxu_dtype)
    Bp = x_p.shape[0]
    grid = (Bp // TB,)

    flat = [x_p]
    for (w, b) in prepped:
        flat.extend([w, b])

    Buffered = getattr(pl, "Buffered", None)

    def build_in_specs(buffered):
        def const_spec(shape):
            if buffered and Buffered is not None:
                # Grid-invariant operand: no need for a second pipeline buffer.
                return pl.BlockSpec(shape, lambda i: (0, 0),
                                    pipeline_mode=Buffered(1))
            return pl.BlockSpec(shape, lambda i: (0, 0))
        specs = [pl.BlockSpec((TB, Din_p), lambda i: (i, 0))]
        for (w, b) in prepped:
            specs.append(const_spec(w.shape))
            specs.append(const_spec(b.shape))
        return specs

    # --- Advisory cost estimate (keeps XLA's scheduler honest around the call).
    itemsize = 2 if use_bf16 else 4
    flops = 0
    transcendentals = 0
    bytes_accessed = x_p.size * itemsize + Bp * Dout * 4
    din = Din_p
    for (w, b) in prepped:
        do = w.shape[1]
        flops += 2 * Bp * din * do
        transcendentals += Bp * do
        bytes_accessed += w.size * itemsize + b.size * 4
        din = do

    kernel = functools.partial(_fused_mlp_kernel, num_layers=L,
                               approx_gelu=approx_gelu, use_bf16=use_bf16)

    def run(buffered):
        return pl.pallas_call(
            kernel,
            out_shape=jax.ShapeDtypeStruct((Bp, Dout), f32),
            grid=grid,
            in_specs=build_in_specs(buffered),
            # Deliberately NOT lane-padding the Dout=2 output (review point):
            # the masked store is negligible vs 64x more HBM write traffic.
            out_specs=pl.BlockSpec((TB, Dout), lambda i: (i, 0)),
            compiler_params=pltpu.CompilerParams(
                dimension_semantics=("parallel",)),
            cost_estimate=pl.CostEstimate(
                flops=flops,
                transcendentals=transcendentals,
                bytes_accessed=bytes_accessed),
        )(*flat)

    try:
        out = run(buffered=True)
    except Exception:
        # pipeline_mode/Buffered not supported by this build -> default buffering.
        out = run(buffered=False)
    return out[:B]


def init_mlp_params(key, hidden_layer_sizes, input_dim=108, output_dim=2):
    """PyTorch-Linear-style init (U(-1/sqrt(fan_in), 1/sqrt(fan_in))).

    W stored as (in, out) so the kernel does x @ W; b stored as (1, out) so
    there is no reshape in the hot path.
    """
    dims = [input_dim] + list(hidden_layer_sizes) + [output_dim]
    params = []
    for i in range(len(dims) - 1):
        fan_in, fan_out = dims[i], dims[i + 1]
        key, kw, kb = jax.random.split(key, 3)
        bound = 1.0 / jnp.sqrt(jnp.float32(fan_in))
        w = jax.random.uniform(kw, (fan_in, fan_out), jnp.float32, -bound, bound)
        b = jax.random.uniform(kb, (1, fan_out), jnp.float32, -bound, bound)
        params.append((w, b))
    return params


def mlp_forward_ref(x, params, *, approx_gelu=True):
    """Pure-JAX f32 reference for sanity checking."""
    h = x
    n = len(params)
    for i, (w, b) in enumerate(params):
        h = h @ w + b
        if i < n - 1:
            h = jax.nn.gelu(h, approximate=approx_gelu)
        else:
            h = jax.nn.sigmoid(h)
    return h


if __name__ == "__main__":
    key = jax.random.PRNGKey(0)
    hidden_layer_sizes = (64, 32)
    batch = 8
    input_dim = 108

    kx, kp, kbig = jax.random.split(key, 3)
    x = jax.random.normal(kx, (batch, input_dim), jnp.float32)
    params = init_mlp_params(kp, hidden_layer_sizes, input_dim=input_dim,
                             output_dim=2)

    # 1) Fast path (bf16 MXU inputs + tanh GELU), checked vs matched f32 ref.
    out_fast = jax.block_until_ready(mlp_forward(x, params))
    ref_tanh = jax.block_until_ready(mlp_forward_ref(x, params, approx_gelu=True))
    assert out_fast.shape == (batch, 2), out_fast.shape
    assert jnp.allclose(out_fast, ref_tanh, atol=2e-2, rtol=2e-2), \
        "fast-path mismatch vs reference"

    # 2) Exact-parity path (f32 matmul + erf GELU) == torch.nn semantics.
    out_exact = jax.block_until_ready(
        mlp_forward(x, params, use_bf16=False, approx_gelu=False))
    ref_erf = jax.block_until_ready(mlp_forward_ref(x, params, approx_gelu=False))
    assert jnp.allclose(out_exact, ref_erf, atol=1e-5, rtol=1e-5), \
        "exact-path mismatch vs reference"

    # 3) Large-batch path: multi-step parallel grid (TB=512) + row padding.
    x_big = jax.random.normal(kbig, (1200, input_dim), jnp.float32)
    out_big = jax.block_until_ready(mlp_forward(x_big, params))
    ref_big = jax.block_until_ready(mlp_forward_ref(x_big, params, approx_gelu=True))
    assert out_big.shape == (1200, 2), out_big.shape
    assert jnp.allclose(out_big, ref_big, atol=2e-2, rtol=2e-2), \
        "large-batch mismatch vs reference"

    print("KERNEL_OK")
</pallas_src>

<mosaic_0001>
module attributes {stable_mosaic.version = 11 : i64} {
  func.func @_fused_mlp_kernel(%arg0: i32, %arg1: memref<8x128xbf16, #tpu.memory_space<vmem>>, %arg2: memref<128x64xbf16, #tpu.memory_space<vmem>>, %arg3: memref<1x64xf32, #tpu.memory_space<vmem>>, %arg4: memref<64x32xbf16, #tpu.memory_space<vmem>>, %arg5: memref<1x32xf32, #tpu.memory_space<vmem>>, %arg6: memref<32x2xbf16, #tpu.memory_space<vmem>>, %arg7: memref<1x2xf32, #tpu.memory_space<vmem>>, %arg8: memref<8x2xf32, #tpu.memory_space<vmem>>) attributes {dimension_semantics = [#tpu.dimension_semantics<parallel>], iteration_bounds = array<i64: 1>, scalar_prefetch = 0 : i64, scratch_operands = 0 : i64, tpu.core_type = #tpu.core_type<tc>, window_params = [{transform_indices = @transform_0, window_bounds = array<i64: 8, 128>}, {pipeline_mode = #tpu.pipeline_mode<synchronous>, transform_indices = @transform_1, window_bounds = array<i64: 128, 64>}, {pipeline_mode = #tpu.pipeline_mode<synchronous>, transform_indices = @transform_2, window_bounds = array<i64: 1, 64>}, {pipeline_mode = #tpu.pipeline_mode<synchronous>, transform_indices = @transform_3, window_bounds = array<i64: 64, 32>}, {pipeline_mode = #tpu.pipeline_mode<synchronous>, transform_indices = @transform_4, window_bounds = array<i64: 1, 32>}, {pipeline_mode = #tpu.pipeline_mode<synchronous>, transform_indices = @transform_5, window_bounds = array<i64: 32, 2>}, {pipeline_mode = #tpu.pipeline_mode<synchronous>, transform_indices = @transform_6, window_bounds = array<i64: 1, 2>}, {transform_indices = @transform_7, window_bounds = array<i64: 8, 2>}]} {
    %c0 = arith.constant 0 : index
    %c0_0 = arith.constant 0 : index
    %0 = vector.load %arg1[%c0, %c0_0] : memref<8x128xbf16, #tpu.memory_space<vmem>>, vector<8x128xbf16>
    %c0_1 = arith.constant 0 : index
    %c0_2 = arith.constant 0 : index
    %1 = vector.load %arg2[%c0_1, %c0_2] : memref<128x64xbf16, #tpu.memory_space<vmem>>, vector<128x64xbf16>
    %c0_3 = arith.constant 0 : index
    %c0_4 = arith.constant 0 : index
    %2 = vector.load %arg3[%c0_3, %c0_4] : memref<1x64xf32, #tpu.memory_space<vmem>>, vector<1x64xf32>
    %cst = arith.constant dense<0.000000e+00> : vector<8x64xf32>
    %3 = tpu.matmul %0, %1, %cst {dimension_numbers = #tpu.dot_dimension_numbers<[1], [0], [0], [1], [0, 0, 1, 1], [], []>} : vector<8x128xbf16>, vector<128x64xbf16>, vector<8x64xf32> -> vector<8x64xf32>
    %4 = vector.broadcast %2 : vector<1x64xf32> to vector<8x64xf32>
    %5 = arith.addf %3, %4 : vector<8x64xf32>
    %cst_5 = arith.constant 5.000000e-01 : f32
    %6 = vector.broadcast %cst_5 : f32 to vector<8x64xf32>
    %7 = arith.mulf %6, %5 : vector<8x64xf32>
    %cst_6 = arith.constant 4.471500e-02 : f32
    %8 = vector.broadcast %cst_6 : f32 to vector<8x64xf32>
    %9 = arith.mulf %8, %5 : vector<8x64xf32>
    %10 = arith.mulf %9, %5 : vector<8x64xf32>
    %11 = arith.mulf %10, %5 : vector<8x64xf32>
    %12 = arith.addf %5, %11 : vector<8x64xf32>
    %cst_7 = arith.constant 0.797884583 : f32
    %13 = vector.broadcast %cst_7 : f32 to vector<8x64xf32>
    %14 = arith.mulf %13, %12 : vector<8x64xf32>
    %15 = math.tanh %14 : vector<8x64xf32>
    %cst_8 = arith.constant 1.000000e+00 : f32
    %16 = vector.broadcast %cst_8 : f32 to vector<8x64xf32>
    %17 = arith.addf %16, %15 : vector<8x64xf32>
    %18 = arith.mulf %7, %17 : vector<8x64xf32>
    %c0_9 = arith.constant 0 : index
    %c0_10 = arith.constant 0 : index
    %19 = vector.load %arg4[%c0_9, %c0_10] : memref<64x32xbf16, #tpu.memory_space<vmem>>, vector<64x32xbf16>
    %c0_11 = arith.constant 0 : index
    %c0_12 = arith.constant 0 : index
    %20 = vector.load %arg5[%c0_11, %c0_12] : memref<1x32xf32, #tpu.memory_space<vmem>>, vector<1x32xf32>
    %21 = arith.truncf %18 : vector<8x64xf32> to vector<8x64xbf16>
    %cst_13 = arith.constant dense<0.000000e+00> : vector<8x32xf32>
    %22 = tpu.matmul %21, %19, %cst_13 {dimension_numbers = #tpu.dot_dimension_numbers<[1], [0], [0], [1], [0, 0, 1, 1], [], []>} : vector<8x64xbf16>, vector<64x32xbf16>, vector<8x32xf32> -> vector<8x32xf32>
    %23 = vector.broadcast %20 : vector<1x32xf32> to vector<8x32xf32>
    %24 = arith.addf %22, %23 : vector<8x32xf32>
    %cst_14 = arith.constant 5.000000e-01 : f32
    %25 = vector.broadcast %cst_14 : f32 to vector<8x32xf32>
    %26 = arith.mulf %25, %24 : vector<8x32xf32>
    %cst_15 = arith.constant 4.471500e-02 : f32
    %27 = vector.broadcast %cst_15 : f32 to vector<8x32xf32>
    %28 = arith.mulf %27, %24 : vector<8x32xf32>
    %29 = arith.mulf %28, %24 : vector<8x32xf32>
    %30 = arith.mulf %29, %24 : vector<8x32xf32>
    %31 = arith.addf %24, %30 : vector<8x32xf32>
    %cst_16 = arith.constant 0.797884583 : f32
    %32 = vector.broadcast %cst_16 : f32 to vector<8x32xf32>
    %33 = arith.mulf %32, %31 : vector<8x32xf32>
    %34 = math.tanh %33 : vector<8x32xf32>
    %cst_17 = arith.constant 1.000000e+00 : f32
    %35 = vector.broadcast %cst_17 : f32 to vector<8x32xf32>
    %36 = arith.addf %35, %34 : vector<8x32xf32>
    %37 = arith.mulf %26, %36 : vector<8x32xf32>
    %c0_18 = arith.constant 0 : index
    %c0_19 = arith.constant 0 : index
    %38 = vector.load %arg6[%c0_18, %c0_19] : memref<32x2xbf16, #tpu.memory_space<vmem>>, vector<32x2xbf16>
    %c0_20 = arith.constant 0 : index
    %c0_21 = arith.constant 0 : index
    %39 = vector.load %arg7[%c0_20, %c0_21] : memref<1x2xf32, #tpu.memory_space<vmem>>, vector<1x2xf32>
    %40 = arith.truncf %37 : vector<8x32xf32> to vector<8x32xbf16>
    %cst_22 = arith.constant dense<0.000000e+00> : vector<8x2xf32>
    %41 = tpu.matmul %40, %38, %cst_22 {dimension_numbers = #tpu.dot_dimension_numbers<[1], [0], [0], [1], [0, 0, 1, 1], [], []>} : vector<8x32xbf16>, vector<32x2xbf16>, vector<8x2xf32> -> vector<8x2xf32>
    %42 = vector.broadcast %39 : vector<1x2xf32> to vector<8x2xf32>
    %43 = arith.addf %41, %42 : vector<8x2xf32>
    %44 = arith.negf %43 : vector<8x2xf32>
    %45 = math.exp %44 : vector<8x2xf32>
    %cst_23 = arith.constant 1.000000e+00 : f32
    %46 = vector.broadcast %cst_23 : f32 to vector<8x2xf32>
    %47 = arith.addf %46, %45 : vector<8x2xf32>
    %48 = arith.divf %46, %47 : vector<8x2xf32>
    %c0_24 = arith.constant 0 : index
    %c0_25 = arith.constant 0 : index
    %49 = vector.load %arg8[%c0_24, %c0_25] : memref<8x2xf32, #tpu.memory_space<vmem>>, vector<8x2xf32>
    tpu.vector_store %arg8[%c0_24, %c0_25], %48 {strides = array<i32>} : memref<8x2xf32, #tpu.memory_space<vmem>>, vector<8x2xf32>,
    return
  }
  func.func @transform_0(%arg0: i32) -> (i32, i32) {
    %c0_i32 = arith.constant 0 : i32
    %c0_i32_0 = arith.constant 0 : i32
    return %arg0, %c0_i32 : i32, i32
  }
  func.func @transform_1(%arg0: i32) -> (i32, i32) {
    %c0_i32 = arith.constant 0 : i32
    %c0_i32_0 = arith.constant 0 : i32
    %c0_i32_1 = arith.constant 0 : i32
    return %c0_i32, %c0_i32_0 : i32, i32
  }
  func.func @transform_2(%arg0: i32) -> (i32, i32) {
    %c0_i32 = arith.constant 0 : i32
    %c0_i32_0 = arith.constant 0 : i32
    %c0_i32_1 = arith.constant 0 : i32
    return %c0_i32, %c0_i32_0 : i32, i32
  }
  func.func @transform_3(%arg0: i32) -> (i32, i32) {
    %c0_i32 = arith.constant 0 : i32
    %c0_i32_0 = arith.constant 0 : i32
    %c0_i32_1 = arith.constant 0 : i32
    return %c0_i32, %c0_i32_0 : i32, i32
  }
  func.func @transform_4(%arg0: i32) -> (i32, i32) {
    %c0_i32 = arith.constant 0 : i32
    %c0_i32_0 = arith.constant 0 : i32
    %c0_i32_1 = arith.constant 0 : i32
    return %c0_i32, %c0_i32_0 : i32, i32
  }
  func.func @transform_5(%arg0: i32) -> (i32, i32) {
    %c0_i32 = arith.constant 0 : i32
    %c0_i32_0 = arith.constant 0 : i32
    %c0_i32_1 = arith.constant 0 : i32
    return %c0_i32, %c0_i32_0 : i32, i32
  }
  func.func @transform_6(%arg0: i32) -> (i32, i32) {
    %c0_i32 = arith.constant 0 : i32
    %c0_i32_0 = arith.constant 0 : i32
    %c0_i32_1 = arith.constant 0 : i32
    return %c0_i32, %c0_i32_0 : i32, i32
  }
  func.func @transform_7(%arg0: i32) -> (i32, i32) {
    %c0_i32 = arith.constant 0 : i32
    %c0_i32_0 = arith.constant 0 : i32
    return %arg0, %c0_i32 : i32, i32
  }
}

module attributes {stable_mosaic.version = 11 : i64} {
  func.func @_fused_mlp_kernel(%arg0: i32, %arg1: memref<8x128xbf16, #tpu.memory_space<vmem>>, %arg2: memref<128x64xbf16, #tpu.memory_space<vmem>>, %arg3: memref<1x64xf32, #tpu.memory_space<vmem>>, %arg4: memref<64x32xbf16, #tpu.memory_space<vmem>>, %arg5: memref<1x32xf32, #tpu.memory_space<vmem>>, %arg6: memref<32x2xbf16, #tpu.memory_space<vmem>>, %arg7: memref<1x2xf32, #tpu.memory_space<vmem>>, %arg8: memref<8x2xf32, #tpu.memory_space<vmem>>) attributes {dimension_semantics = [#tpu.dimension_semantics<parallel>], iteration_bounds = array<i64: 1>, scalar_prefetch = 0 : i64, scratch_operands = 0 : i64, tpu.core_type = #tpu.core_type<tc>, window_params = [{transform_indices = @transform_0, window_bounds = array<i64: 8, 128>}, {pipeline_mode = #tpu.pipeline_mode<synchronous>, transform_indices = @transform_1, window_bounds = array<i64: 128, 64>}, {pipeline_mode = #tpu.pipeline_mode<synchronous>, transform_indices = @transform_2, window_bounds = array<i64: 1, 64>}, {pipeline_mode = #tpu.pipeline_mode<synchronous>, transform_indices = @transform_3, window_bounds = array<i64: 64, 32>}, {pipeline_mode = #tpu.pipeline_mode<synchronous>, transform_indices = @transform_4, window_bounds = array<i64: 1, 32>}, {pipeline_mode = #tpu.pipeline_mode<synchronous>, transform_indices = @transform_5, window_bounds = array<i64: 32, 2>}, {pipeline_mode = #tpu.pipeline_mode<synchronous>, transform_indices = @transform_6, window_bounds = array<i64: 1, 2>}, {transform_indices = @transform_7, window_bounds = array<i64: 8, 2>}]} {
    %c0 = arith.constant 0 : index
    %c0_0 = arith.constant 0 : index
    %0 = vector.load %arg1[%c0, %c0_0] : memref<8x128xbf16, #tpu.memory_space<vmem>>, vector<8x128xbf16>
    %c0_1 = arith.constant 0 : index
    %c0_2 = arith.constant 0 : index
    %1 = vector.load %arg2[%c0_1, %c0_2] : memref<128x64xbf16, #tpu.memory_space<vmem>>, vector<128x64xbf16>
    %c0_3 = arith.constant 0 : index
    %c0_4 = arith.constant 0 : index
    %2 = vector.load %arg3[%c0_3, %c0_4] : memref<1x64xf32, #tpu.memory_space<vmem>>, vector<1x64xf32>
    %cst = arith.constant dense<0.000000e+00> : vector<8x64xf32>
    %3 = tpu.matmul %0, %1, %cst {dimension_numbers = #tpu.dot_dimension_numbers<[1], [0], [0], [1], [0, 0, 1, 1], [], []>} : vector<8x128xbf16>, vector<128x64xbf16>, vector<8x64xf32> -> vector<8x64xf32>
    %4 = vector.broadcast %2 : vector<1x64xf32> to vector<8x64xf32>
    %5 = arith.addf %3, %4 : vector<8x64xf32>
    %cst_5 = arith.constant 5.000000e-01 : f32
    %6 = vector.broadcast %cst_5 : f32 to vector<8x64xf32>
    %7 = arith.mulf %6, %5 : vector<8x64xf32>
    %cst_6 = arith.constant 4.471500e-02 : f32
    %8 = vector.broadcast %cst_6 : f32 to vector<8x64xf32>
    %9 = arith.mulf %8, %5 : vector<8x64xf32>
    %10 = arith.mulf %9, %5 : vector<8x64xf32>
    %11 = arith.mulf %10, %5 : vector<8x64xf32>
    %12 = arith.addf %5, %11 : vector<8x64xf32>
    %cst_7 = arith.constant 0.797884583 : f32
    %13 = vector.broadcast %cst_7 : f32 to vector<8x64xf32>
    %14 = arith.mulf %13, %12 : vector<8x64xf32>
    %15 = math.tanh %14 : vector<8x64xf32>
    %cst_8 = arith.constant 1.000000e+00 : f32
    %16 = vector.broadcast %cst_8 : f32 to vector<8x64xf32>
    %17 = arith.addf %16, %15 : vector<8x64xf32>
    %18 = arith.mulf %7, %17 : vector<8x64xf32>
    %c0_9 = arith.constant 0 : index
    %c0_10 = arith.constant 0 : index
    %19 = vector.load %arg4[%c0_9, %c0_10] : memref<64x32xbf16, #tpu.memory_space<vmem>>, vector<64x32xbf16>
    %c0_11 = arith.constant 0 : index
    %c0_12 = arith.constant 0 : index
    %20 = vector.load %arg5[%c0_11, %c0_12] : memref<1x32xf32, #tpu.memory_space<vmem>>, vector<1x32xf32>
    %21 = arith.truncf %18 : vector<8x64xf32> to vector<8x64xbf16>
    %cst_13 = arith.constant dense<0.000000e+00> : vector<8x32xf32>
    %22 = tpu.matmul %21, %19, %cst_13 {dimension_numbers = #tpu.dot_dimension_numbers<[1], [0], [0], [1], [0, 0, 1, 1], [], []>} : vector<8x64xbf16>, vector<64x32xbf16>, vector<8x32xf32> -> vector<8x32xf32>
    %23 = vector.broadcast %20 : vector<1x32xf32> to vector<8x32xf32>
    %24 = arith.addf %22, %23 : vector<8x32xf32>
    %cst_14 = arith.constant 5.000000e-01 : f32
    %25 = vector.broadcast %cst_14 : f32 to vector<8x32xf32>
    %26 = arith.mulf %25, %24 : vector<8x32xf32>
    %cst_15 = arith.constant 4.471500e-02 : f32
    %27 = vector.broadcast %cst_15 : f32 to vector<8x32xf32>
    %28 = arith.mulf %27, %24 : vector<8x32xf32>
    %29 = arith.mulf %28, %24 : vector<8x32xf32>
    %30 = arith.mulf %29, %24 : vector<8x32xf32>
    %31 = arith.addf %24, %30 : vector<8x32xf32>
    %cst_16 = arith.constant 0.797884583 : f32
    %32 = vector.broadcast %cst_16 : f32 to vector<8x32xf32>
    %33 = arith.mulf %32, %31 : vector<8x32xf32>
    %34 = math.tanh %33 : vector<8x32xf32>
    %cst_17 = arith.constant 1.000000e+00 : f32
    %35 = vector.broadcast %cst_17 : f32 to vector<8x32xf32>
    %36 = arith.addf %35, %34 : vector<8x32xf32>
    %37 = arith.mulf %26, %36 : vector<8x32xf32>
    %c0_18 = arith.constant 0 : index
    %c0_19 = arith.constant 0 : index
    %38 = vector.load %arg6[%c0_18, %c0_19] : memref<32x2xbf16, #tpu.memory_space<vmem>>, vector<32x2xbf16>
    %c0_20 = arith.constant 0 : index
    %c0_21 = arith.constant 0 : index
    %39 = vector.load %arg7[%c0_20, %c0_21] : memref<1x2xf32, #tpu.memory_space<vmem>>, vector<1x2xf32>
    %40 = arith.truncf %37 : vector<8x32xf32> to vector<8x32xbf16>
    %cst_22 = arith.constant dense<0.000000e+00> : vector<8x2xf32>
    %41 = tpu.matmul %40, %38, %cst_22 {dimension_numbers = #tpu.dot_dimension_numbers<[1], [0], [0], [1], [0, 0, 1, 1], [], []>} : vector<8x32xbf16>, vector<32x2xbf16>, vector<8x2xf32> -> vector<8x2xf32>
    %42 = vector.broadcast %39 : vector<1x2xf32> to vector<8x2xf32>
    %43 = arith.addf %41, %42 : vector<8x2xf32>
    %44 = arith.negf %43 : vector<8x2xf32>
    %45 = math.exp %44 : vector<8x2xf32>
    %cst_23 = arith.constant 1.000000e+00 : f32
    %46 = vector.broadcast %cst_23 : f32 to vector<8x2xf32>
    %47 = arith.addf %46, %45 : vector<8x2xf32>
    %48 = arith.divf %46, %47 : vector<8x2xf32>
    %c0_24 = arith.constant 0 : index
    %c0_25 = arith.constant 0 : index
    %49 = vector.load %arg8[%c0_24, %c0_25] : memref<8x2xf32, #tpu.memory_space<vmem>>, vector<8x2xf32>
    tpu.vector_store %arg8[%c0_24, %c0_25], %48 {strides = array<i32>} : memref<8x2xf32, #tpu.memory_space<vmem>>, vector<8x2xf32>,
    return
  }
  func.func @transform_0(%arg0: i32) -> (i32, i32) {
    %c0_i32 = arith.constant 0 : i32
    %c0_i32_0 = arith.constant 0 : i32
    return %arg0, %c0_i32 : i32, i32
  }
  func.func @transform_1(%arg0: i32) -> (i32, i32) {
    %c0_i32 = arith.constant 0 : i32
    %c0_i32_0 = arith.constant 0 : i32
    %c0_i32_1 = arith.constant 0 : i32
    return %c0_i32, %c0_i32_0 : i32, i32
  }
  func.func @transform_2(%arg0: i32) -> (i32, i32) {
    %c0_i32 = arith.constant 0 : i32
    %c0_i32_0 = arith.constant 0 : i32
    %c0_i32_1 = arith.constant 0 : i32
    return %c0_i32, %c0_i32_0 : i32, i32
  }
  func.func @transform_3(%arg0: i32) -> (i32, i32) {
    %c0_i32 = arith.constant 0 : i32
    %c0_i32_0 = arith.constant 0 : i32
    %c0_i32_1 = arith.constant 0 : i32
    return %c0_i32, %c0_i32_0 : i32, i32
  }
  func.func @transform_4(%arg0: i32) -> (i32, i32) {
    %c0_i32 = arith.constant 0 : i32
    %c0_i32_0 = arith.constant 0 : i32
    %c0_i32_1 = arith.constant 0 : i32
    return %c0_i32, %c0_i32_0 : i32, i32
  }
  func.func @transform_5(%arg0: i32) -> (i32, i32) {
    %c0_i32 = arith.constant 0 : i32
    %c0_i32_0 = arith.constant 0 : i32
    %c0_i32_1 = arith.constant 0 : i32
    return %c0_i32, %c0_i32_0 : i32, i32
  }
  func.func @transform_6(%arg0: i32) -> (i32, i32) {
    %c0_i32 = arith.constant 0 : i32
    %c0_i32_0 = arith.constant 0 : i32
    %c0_i32_1 = arith.constant 0 : i32
    return %c0_i32, %c0_i32_0 : i32, i32
  }
  func.func @transform_7(%arg0: i32) -> (i32, i32) {
    %c0_i32 = arith.constant 0 : i32
    %c0_i32_0 = arith.constant 0 : i32
    return %arg0, %c0_i32 : i32, i32
  }
}

</mosaic_0001>

<bundles_post_ra>
// kernel: tpu_custom_call.1
= control target key start
LH: loop header
LB: loop body
LE: loop exit
PB: predicated region body
PF: predicated region fallthrough
CT: control target
= control target key end

     0   :  { %v422_v0 = vmov 0.0   ;;  %vm423_vm0 = vmmov 0   ;;  %vm188_vm1 = vcmask 523264   ;;  %vm265_vm2 = vcmask 261120   ;;  %s541_s1 = inlined_call_operand.vmem [shape: bf16[128,64], index: 1, kind: input, shape index: {}]   ;;  %s542_s0 = inlined_call_operand.vmem [shape: bf16[8,128], index: 0, kind: input, shape index: {}]   ;;  %s543_s3 = inlined_call_operand.vmem [shape: bf16[64,32], index: 3, kind: input, shape index: {}]   ;;  %s544_s2 = inlined_call_operand.vmem [shape: f32[1,64], index: 2, kind: input, shape index: {}]   ;;  %s545_s5 = inlined_call_operand.vmem [shape: bf16[32,2], index: 5, kind: input, shape index: {}]   ;;  %s546_s4 = inlined_call_operand.vmem [shape: f32[1,32], index: 4, kind: input, shape index: {}]   ;;  %s547_s6 = inlined_call_operand.vmem [shape: f32[1,2], index: 6, kind: input, shape index: {}]   ;;  %s548_s7 = inlined_call_operand.vmem [shape: f32[8,2], index: 7, kind: output, shape index: {}]  }
   0x1   :  { %358 = vmatprep.subr.bf16.mxu0 %v422_v0  ;;  %v400_v1 = vld [vmem:[%s541_s1] sm:$0xff]   ;;  %374 = vmatprep.mubr.msk.bf16.mxu0 %vm423_vm0, %v422_v0  ;;  %v401_v2 = vld [vmem:[%s541_s1 + $0x8] sm:$0xff]   ;;  %v402_v3 = vld [vmem:[%s541_s1 + $0x10] sm:$0xff]   ;;  %vm315_vm3 = vcmask 15360  }
   0x2   :  { %378 = vmatprep.subr.bf16.mxu1 %v422_v0  ;;  %386 = vmatprep.mubr.msk.bf16.mxu1 %vm423_vm0, %v422_v0  ;;  %v403_v4 = vld [vmem:[%s541_s1 + $0x18] sm:$0xff]   ;;  %v404_v5 = vld [vmem:[%s541_s1 + $0x20] sm:$0xff]   ;;  %v405_v6 = vld [vmem:[%s541_s1 + $0x28] sm:$0xff]  }
   0x3   :  { %359 = vmatpush3.bf16.msra.mxu0 %v400_v1  ;;  %v406_v7 = vld [vmem:[%s541_s1 + $0x30] sm:$0xff]   ;;  %v407_v8 = vld [vmem:[%s541_s1 + $0x38] sm:$0xff]   ;;  %v27_v9 = vld [vmem:[%s542_s0] sm:$0xf] }
   0x4   :  { %360 = vmatprep.subr.bf16.mxu0 %v422_v0  ;;  %v408_v10 = vld [vmem:[%s543_s3] sm:$0xff]   ;;  %v409_v11 = vld [vmem:[%s543_s3 + $0x8] sm:$0xff]   ;;  %v410_v12 = vld [vmem:[%s543_s3 + $0x10] sm:$0xff]  }
   0x5   :  { %379 = vmatpush3.bf16.msra.mxu1 %v408_v10  ;;  %v411_v13 = vld [vmem:[%s543_s3 + $0x18] sm:$0xff]   ;;  %v321_v14 = vld [vmem:[%s544_s2] ss:$0 sm:$0xff]  ;;  %v413_v31 = vld [vmem:[%s545_s5 + $0x8] sm:$0xff]  }
   0x6   :  { %380 = vmatprep.subr.bf16.mxu1 %v422_v0  ;;  %v412_v30 = vld [vmem:[%s545_s5] sm:$0xff]  }
   0x7   :  { %361 = vmatpush3.bf16.msra.mxu0 %v401_v2  ;;  %v330_v32 = vld [vmem:[%s546_s4] ss:$0 sm:$0xff] }
   0x8   :  { %362 = vmatprep.subr.bf16.mxu0 %v422_v0  ;;  %v336_v48 = vld [vmem:[%s547_s6] ss:$0 sm:$0xff] }
   0x9   :  { %381 = vmatpush3.bf16.msra.mxu1 %v409_v11 }
   0xa   :  { %382 = vmatprep.subr.bf16.mxu1 %v422_v0 }
   0xb   :  { %363 = vmatpush3.bf16.msra.mxu0 %v402_v3 }
   0xc   :  { %364 = vmatprep.subr.bf16.mxu0 %v422_v0 }
   0xd   :  { %383 = vmatpush3.bf16.msra.mxu1 %v410_v12 }
   0xe   :  { %384 = vmatprep.subr.bf16.mxu1 %v422_v0 }
   0xf   :  { %365 = vmatpush3.bf16.msra.mxu0 %v403_v4 }
  0x10   :  { %366 = vmatprep.subr.bf16.mxu0 %v422_v0 }
  0x11   :  { %385 = vmatpush3.bf16.msra.mxu1 %v411_v13 }
  0x12   :  { %390 = vmatprep.subr.bf16.mxu1 %v422_v0 }
  0x13   :  { %367 = vmatpush3.bf16.msra.mxu0 %v404_v5 }
  0x14   :  { %368 = vmatprep.subr.bf16.mxu0 %v422_v0 }
  0x17   :  { %369 = vmatpush3.bf16.msra.mxu0 %v405_v6 }
  0x18   :  { %370 = vmatprep.subr.bf16.mxu0 %v422_v0 }
  0x1b   :  { %371 = vmatpush3.bf16.msra.mxu0 %v406_v7 }
  0x1c   :  { %372 = vmatprep.subr.bf16.mxu0 %v422_v0 }
  0x1f   :  { %373 = vmatpush3.bf16.msra.mxu0 %v407_v8 }
  0x22   :  { %375 = vmatmul.mubr.bf16.vlgmr.msra.gmra.mrb[0].mxu0 %v27_v9 }
  0xf5   :  { %v133_v15 = vpop.f32.mrb[0].mxu0 }
  0xf6   :  { %v134_v16 = vadd.f32 %v321_v14, %v133_v15  ;;  %v376_v17 = vpop.f32.mrb[1].mxu0 }
  0xf7   :  { %v136_v18 = vpop.f32.mrb[2].mxu0 }
  0xf8   :  { %v140_v19 = vmul.f32 0.044715, %v134_v16  ;;  %v377_v20 = vpop.f32.mrb[3].mxu0  ;;  %v139_v26 = vmul.f32 0.5, %v134_v16 }
  0xfa   :  { %v141_v21 = vmul.f32 %v140_v19, %v134_v16 }
  0xfc   :  { %v142_v22 = vmul.f32 %v141_v21, %v134_v16 }
  0xfe   :  { %v143_v23 = vadd.f32 %v142_v22, %v134_v16 }
 0x100   :  { %v144_v24 = vmul.f32 0.7978846, %v143_v23 }
 0x102   :  { %414 = vtanh.f32 %v144_v24 }
 0x10c   :  { %v415_v25 = vpop.eup %414 }
 0x10d   :  { %v146_v27 = vadd.f32 1.0, %v415_v25 }
 0x10f   :  { %v147_v28 = vmul.f32 %v146_v27, %v139_v26 }
 0x111   :  { %v157_v29 = vpack.c.bf16 %v147_v28, %v147_v28 }
 0x113   :  { %387 = vmatmul.mubr.msk.bf16.vlgmr.msra.gmra.mrb[0].mxu1 %vm188_vm1, %v157_v29 }
 0x114   :  { %394 = vmatprep.mubr.msk.bf16.mxu1 %vm423_vm0, %v422_v0  ;;  %391 = vmatpush3.bf16.msra.mxu1 %v412_v30 }
 0x115   :  { %392 = vmatprep.subr.bf16.mxu1 %v422_v0 }
 0x118   :  { %393 = vmatpush3.bf16.msra.mxu1 %v413_v31 }
 0x1e6   :  { %v226_v33 = vpop.f32.mrb[0].mxu1 }
 0x1e7   :  { %v227_v34 = vadd.f32 %v330_v32, %v226_v33  ;;  %v388_v35 = vpop.f32.mrb[1].mxu1 }
 0x1e8   :  { %v229_v36 = vpop.f32.mrb[2].mxu1 }
 0x1e9   :  { %v233_v37 = vmul.f32 0.044715, %v227_v34  ;;  %v389_v38 = vpop.f32.mrb[3].mxu1  ;;  %v232_v44 = vmul.f32 0.5, %v227_v34 }
 0x1eb   :  { %v234_v39 = vmul.f32 %v233_v37, %v227_v34 }
 0x1ed   :  { %v235_v40 = vmul.f32 %v234_v39, %v227_v34 }
 0x1ef   :  { %v236_v41 = vadd.f32 %v235_v40, %v227_v34 }
 0x1f1   :  { %v237_v42 = vmul.f32 0.7978846, %v236_v41 }
 0x1f3   :  { %416 = vtanh.f32 %v237_v42 }
 0x1fd   :  { %v417_v43 = vpop.eup %416 }
 0x1fe   :  { %v239_v45 = vadd.f32 1.0, %v417_v43 }
 0x200   :  { %v240_v46 = vmul.f32 %v239_v45, %v232_v44 }
 0x202   :  { %v246_v47 = vpack.c.bf16 %v240_v46, %v240_v46 }
 0x204   :  { %395 = vmatmul.mubr.msk.bf16.vlgmr.msra.gmra.mrb[4].mxu1 %vm265_vm2, %v246_v47 }
 0x2d7   :  { %v303_v49 = vpop.f32.mrb[4].mxu1 }
 0x2d8   :  { %v304_v50 = vadd.f32 %v336_v48, %v303_v49  ;;  %v396_v51 = vpop.f32.mrb[5].mxu1 }
 0x2d9   :  { %v306_v52 = vpop.f32.mrb[6].mxu1 }
 0x2da   :  { %v340_v53 = vmul.f32 -1.442695, %v304_v50  ;;  %v397_v54 = vpop.f32.mrb[7].mxu1 }
 0x2dc   :  { %418 = vpow2.f32 %v340_v53 }
 0x2e6   :  { %v419_v55 = vpop.eup %418 }
 0x2e7   :  { %v312_v56 = vadd.f32 1.0, %v419_v55 }
 0x2e9   :  { %420 = vrcp.f32 %v312_v56 }
 0x2f3   :  { %v421_v57 = vpop.eup %420 }
 0x2f4   :  { %316 = vst.msk [vmem:[%s548_s7] sm:$0xff] %vm315_vm3, %v421_v57 }

// kernel: tpu_custom_call.1
= control target key start
LH: loop header
LB: loop body
LE: loop exit
PB: predicated region body
PF: predicated region fallthrough
CT: control target
= control target key end

     0   :  { %v422_v0 = vmov 0.0   ;;  %vm423_vm0 = vmmov 0   ;;  %vm188_vm1 = vcmask 523264   ;;  %vm265_vm2 = vcmask 261120   ;;  %s541_s1 = inlined_call_operand.vmem [shape: bf16[128,64], index: 1, kind: input, shape index: {}]   ;;  %s542_s0 = inlined_call_operand.vmem [shape: bf16[8,128], index: 0, kind: input, shape index: {}]   ;;  %s543_s3 = inlined_call_operand.vmem [shape: bf16[64,32], index: 3, kind: input, shape index: {}]   ;;  %s544_s2 = inlined_call_operand.vmem [shape: f32[1,64], index: 2, kind: input, shape index: {}]   ;;  %s545_s5 = inlined_call_operand.vmem [shape: bf16[32,2], index: 5, kind: input, shape index: {}]   ;;  %s546_s4 = inlined_call_operand.vmem [shape: f32[1,32], index: 4, kind: input, shape index: {}]   ;;  %s547_s6 = inlined_call_operand.vmem [shape: f32[1,2], index: 6, kind: input, shape index: {}]   ;;  %s548_s7 = inlined_call_operand.vmem [shape: f32[8,2], index: 7, kind: output, shape index: {}]  }
   0x1   :  { %358 = vmatprep.subr.bf16.mxu0 %v422_v0  ;;  %v400_v1 = vld [vmem:[%s541_s1] sm:$0xff]   ;;  %374 = vmatprep.mubr.msk.bf16.mxu0 %vm423_vm0, %v422_v0  ;;  %v401_v2 = vld [vmem:[%s541_s1 + $0x8] sm:$0xff]   ;;  %v402_v3 = vld [vmem:[%s541_s1 + $0x10] sm:$0xff]   ;;  %vm315_vm3 = vcmask 15360  }
   0x2   :  { %378 = vmatprep.subr.bf16.mxu1 %v422_v0  ;;  %386 = vmatprep.mubr.msk.bf16.mxu1 %vm423_vm0, %v422_v0  ;;  %v403_v4 = vld [vmem:[%s541_s1 + $0x18] sm:$0xff]   ;;  %v404_v5 = vld [vmem:[%s541_s1 + $0x20] sm:$0xff]   ;;  %v405_v6 = vld [vmem:[%s541_s1 + $0x28] sm:$0xff]  }
   0x3   :  { %359 = vmatpush3.bf16.msra.mxu0 %v400_v1  ;;  %v406_v7 = vld [vmem:[%s541_s1 + $0x30] sm:$0xff]   ;;  %v407_v8 = vld [vmem:[%s541_s1 + $0x38] sm:$0xff]   ;;  %v27_v9 = vld [vmem:[%s542_s0] sm:$0xf] }
   0x4   :  { %360 = vmatprep.subr.bf16.mxu0 %v422_v0  ;;  %v408_v10 = vld [vmem:[%s543_s3] sm:$0xff]   ;;  %v409_v11 = vld [vmem:[%s543_s3 + $0x8] sm:$0xff]   ;;  %v410_v12 = vld [vmem:[%s543_s3 + $0x10] sm:$0xff]  }
   0x5   :  { %379 = vmatpush3.bf16.msra.mxu1 %v408_v10  ;;  %v411_v13 = vld [vmem:[%s543_s3 + $0x18] sm:$0xff]   ;;  %v321_v14 = vld [vmem:[%s544_s2] ss:$0 sm:$0xff]  ;;  %v413_v31 = vld [vmem:[%s545_s5 + $0x8] sm:$0xff]  }
   0x6   :  { %380 = vmatprep.subr.bf16.mxu1 %v422_v0  ;;  %v412_v30 = vld [vmem:[%s545_s5] sm:$0xff]  }
   0x7   :  { %361 = vmatpush3.bf16.msra.mxu0 %v401_v2  ;;  %v330_v32 = vld [vmem:[%s546_s4] ss:$0 sm:$0xff] }
   0x8   :  { %362 = vmatprep.subr.bf16.mxu0 %v422_v0  ;;  %v336_v48 = vld [vmem:[%s547_s6] ss:$0 sm:$0xff] }
   0x9   :  { %381 = vmatpush3.bf16.msra.mxu1 %v409_v11 }
   0xa   :  { %382 = vmatprep.subr.bf16.mxu1 %v422_v0 }
   0xb   :  { %363 = vmatpush3.bf16.msra.mxu0 %v402_v3 }
   0xc   :  { %364 = vmatprep.subr.bf16.mxu0 %v422_v0 }
   0xd   :  { %383 = vmatpush3.bf16.msra.mxu1 %v410_v12 }
   0xe   :  { %384 = vmatprep.subr.bf16.mxu1 %v422_v0 }
   0xf   :  { %365 = vmatpush3.bf16.msra.mxu0 %v403_v4 }
  0x10   :  { %366 = vmatprep.subr.bf16.mxu0 %v422_v0 }
  0x11   :  { %385 = vmatpush3.bf16.msra.mxu1 %v411_v13 }
  0x12   :  { %390 = vmatprep.subr.bf16.mxu1 %v422_v0 }
  0x13   :  { %367 = vmatpush3.bf16.msra.mxu0 %v404_v5 }
  0x14   :  { %368 = vmatprep.subr.bf16.mxu0 %v422_v0 }
  0x17   :  { %369 = vmatpush3.bf16.msra.mxu0 %v405_v6 }
  0x18   :  { %370 = vmatprep.subr.bf16.mxu0 %v422_v0 }
  0x1b   :  { %371 = vmatpush3.bf16.msra.mxu0 %v406_v7 }
  0x1c   :  { %372 = vmatprep.subr.bf16.mxu0 %v422_v0 }
  0x1f   :  { %373 = vmatpush3.bf16.msra.mxu0 %v407_v8 }
  0x22   :  { %375 = vmatmul.mubr.bf16.vlgmr.msra.gmra.mrb[0].mxu0 %v27_v9 }
  0xf5   :  { %v133_v15 = vpop.f32.mrb[0].mxu0 }
  0xf6   :  { %v134_v16 = vadd.f32 %v321_v14, %v133_v15  ;;  %v376_v17 = vpop.f32.mrb[1].mxu0 }
  0xf7   :  { %v136_v18 = vpop.f32.mrb[2].mxu0 }
  0xf8   :  { %v140_v19 = vmul.f32 0.044715, %v134_v16  ;;  %v377_v20 = vpop.f32.mrb[3].mxu0  ;;  %v139_v26 = vmul.f32 0.5, %v134_v16 }
  0xfa   :  { %v141_v21 = vmul.f32 %v140_v19, %v134_v16 }
  0xfc   :  { %v142_v22 = vmul.f32 %v141_v21, %v134_v16 }
  0xfe   :  { %v143_v23 = vadd.f32 %v142_v22, %v134_v16 }
 0x100   :  { %v144_v24 = vmul.f32 0.7978846, %v143_v23 }
 0x102   :  { %414 = vtanh.f32 %v144_v24 }
 0x10c   :  { %v415_v25 = vpop.eup %414 }
 0x10d   :  { %v146_v27 = vadd.f32 1.0, %v415_v25 }
 0x10f   :  { %v147_v28 = vmul.f32 %v146_v27, %v139_v26 }
 0x111   :  { %v157_v29 = vpack.c.bf16 %v147_v28, %v147_v28 }
 0x113   :  { %387 = vmatmul.mubr.msk.bf16.vlgmr.msra.gmra.mrb[0].mxu1 %vm188_vm1, %v157_v29 }
 0x114   :  { %394 = vmatprep.mubr.msk.bf16.mxu1 %vm423_vm0, %v422_v0  ;;  %391 = vmatpush3.bf16.msra.mxu1 %v412_v30 }
 0x115   :  { %392 = vmatprep.subr.bf16.mxu1 %v422_v0 }
 0x118   :  { %393 = vmatpush3.bf16.msra.mxu1 %v413_v31 }
 0x1e6   :  { %v226_v33 = vpop.f32.mrb[0].mxu1 }
 0x1e7   :  { %v227_v34 = vadd.f32 %v330_v32, %v226_v33  ;;  %v388_v35 = vpop.f32.mrb[1].mxu1 }
 0x1e8   :  { %v229_v36 = vpop.f32.mrb[2].mxu1 }
 0x1e9   :  { %v233_v37 = vmul.f32 0.044715, %v227_v34  ;;  %v389_v38 = vpop.f32.mrb[3].mxu1  ;;  %v232_v44 = vmul.f32 0.5, %v227_v34 }
 0x1eb   :  { %v234_v39 = vmul.f32 %v233_v37, %v227_v34 }
 0x1ed   :  { %v235_v40 = vmul.f32 %v234_v39, %v227_v34 }
 0x1ef   :  { %v236_v41 = vadd.f32 %v235_v40, %v227_v34 }
 0x1f1   :  { %v237_v42 = vmul.f32 0.7978846, %v236_v41 }
 0x1f3   :  { %416 = vtanh.f32 %v237_v42 }
 0x1fd   :  { %v417_v43 = vpop.eup %416 }
 0x1fe   :  { %v239_v45 = vadd.f32 1.0, %v417_v43 }
 0x200   :  { %v240_v46 = vmul.f32 %v239_v45, %v232_v44 }
 0x202   :  { %v246_v47 = vpack.c.bf16 %v240_v46, %v240_v46 }
 0x204   :  { %395 = vmatmul.mubr.msk.bf16.vlgmr.msra.gmra.mrb[4].mxu1 %vm265_vm2, %v246_v47 }
 0x2d7   :  { %v303_v49 = vpop.f32.mrb[4].mxu1 }
 0x2d8   :  { %v304_v50 = vadd.f32 %v336_v48, %v303_v49  ;;  %v396_v51 = vpop.f32.mrb[5].mxu1 }
 0x2d9   :  { %v306_v52 = vpop.f32.mrb[6].mxu1 }
 0x2da   :  { %v340_v53 = vmul.f32 -1.442695, %v304_v50  ;;  %v397_v54 = vpop.f32.mrb[7].mxu1 }
 0x2dc   :  { %418 = vpow2.f32 %v340_v53 }
 0x2e6   :  { %v419_v55 = vpop.eup %418 }
 0x2e7   :  { %v312_v56 = vadd.f32 1.0, %v419_v55 }
 0x2e9   :  { %420 = vrcp.f32 %v312_v56 }
 0x2f3   :  { %v421_v57 = vpop.eup %420 }
 0x2f4   :  { %316 = vst.msk [vmem:[%s548_s7] sm:$0xff] %vm315_vm3, %v421_v57 }

</bundles_post_ra>
